<compile_context>
chip_gen: v7x
topology: tpu7x:2x2x1
jax: 0.10.0
libtpu: 0.0.40
codegen_flags: <defaults>
</compile_context>

<pallas_src>
import jax
import jax.numpy as jnp
from jax.experimental import pallas as pl
from jax.experimental.pallas import tpu as pltpu


_LANE = 128


def _round_up(n, m):
    return (n + m - 1) // m * m


# ----------------------------- kernel -------------------------------------- #

def autoencoder_kernel(x_ref, w12_ref, b12_ref, w34_ref, b34_ref, out_ref):
    """One batch tile: out = relu(x @ W12 + b12) @ W34 + b34 (fp32 accumulation)."""
    x = x_ref[...]                                                  # (tm, D_pad) bf16
    h = jnp.dot(x, w12_ref[...],
                preferred_element_type=jnp.float32) + b12_ref[...]  # (tm, H_pad) f32
    enc = jnp.maximum(h, 0.0)                                       # ReLU in fp32
    dec = jnp.dot(enc.astype(w34_ref.dtype), w34_ref[...],
                  preferred_element_type=jnp.float32) + b34_ref[...]
    out_ref[...] = dec.astype(out_ref.dtype)


# ----------------------------- wrapper -------------------------------------- #

def fuse_params(params, d_in, compute_dtype=jnp.bfloat16):
    """Exact fusion of the two encoder / two decoder Linears + lane padding."""
    w1, b1, w2, b2 = params["w1"], params["b1"], params["w2"], params["b2"]
    w3, b3, w4, b4 = params["w3"], params["b3"], params["w4"], params["b4"]

    w12 = w1 @ w2                   # (D_in, H)
    b12 = b1 @ w2 + b2              # (1, H)
    w34 = w3 @ w4                   # (H, D_in)
    b34 = b3 @ w4 + b4              # (1, D_in)

    h = w12.shape[1]
    d_pad = max(_round_up(d_in, _LANE), _LANE)
    h_pad = max(_round_up(h, _LANE), _LANE)

    # Zero padding is exact: padded x columns hit zero W12 rows; padded hidden
    # columns are 0 + 0 bias -> relu -> 0, multiplying zero W34 rows; padded
    # output columns are sliced off outside.
    if d_pad != d_in or h_pad != h:
        w12 = jnp.pad(w12, ((0, d_pad - d_in), (0, h_pad - h)))
        b12 = jnp.pad(b12, ((0, 0), (0, h_pad - h)))
        w34 = jnp.pad(w34, ((0, h_pad - h), (0, d_pad - d_in)))
        b34 = jnp.pad(b34, ((0, 0), (0, d_pad - d_in)))

    return (w12.astype(compute_dtype), b12.astype(jnp.float32),
            w34.astype(compute_dtype), b34.astype(jnp.float32), d_pad, h_pad)


def _pick_tm(batch, d_pad, in_itemsize, out_itemsize):
    """Largest batch tile that keeps the pipelined x/out buffers small and, when
    possible, gives >= 2 grid steps (so both v7x TensorCores get work)."""
    budget = 24 * (1 << 20)  # conservative vs v7x's 64 MiB physical VMEM
    candidates = [t for t in (1024, 512, 256, 128, 64, 32, 16, 8)
                  if t <= batch and batch % t == 0]
    preferred = [t for t in candidates if t < batch] or candidates
    for t in preferred:
        if 2 * t * d_pad * (in_itemsize + out_itemsize) <= budget:
            return t
    return candidates[-1] if candidates else batch


def autoencoder_forward(x, params, *, tm=None, compute_dtype=jnp.bfloat16):
    """x: (B, input_dim). params: dict of w1..w4 / b1..b4 (see init_params)."""
    B, D_in = x.shape
    out_dtype = x.dtype

    w12, b12, w34, b34, D_pad, H_pad = fuse_params(params, D_in, compute_dtype)

    x_in = x if D_pad == D_in else jnp.pad(x, ((0, 0), (0, D_pad - D_in)))
    x_in = x_in.astype(compute_dtype)

    in_itemsize = jnp.dtype(compute_dtype).itemsize
    out_itemsize = jnp.dtype(out_dtype).itemsize
    if tm is None:
        tm = _pick_tm(B, D_pad, in_itemsize, out_itemsize)
    assert B % tm == 0, "batch must be divisible by the batch tile"
    assert tm == B or tm % 8 == 0, "batch tile must be a multiple of 8 (sublane)"
    grid = (B // tm,)

    # VMEM budget: double-buffered x/out tiles + single-copy weights + live f32 temps.
    weight_bytes = int(sum(int(a.size) * a.dtype.itemsize
                           for a in (w12, b12, w34, b34)))
    est = (2 * tm * D_pad * (in_itemsize + out_itemsize)
           + weight_bytes + 4 * tm * max(H_pad, D_pad) * 4)
    vmem_limit = int(min(max(2 * est, 16 * (1 << 20)), 48 * (1 << 20)))

    cost = pl.CostEstimate(
        flops=int(4 * B * D_pad * H_pad),      # two matmuls: 2*B*D_pad*H_pad each
        transcendentals=0,
        bytes_accessed=int(B * D_pad * (in_itemsize + out_itemsize) + weight_bytes),
    )

    # Constants (weights/biases): whole-array VMEM residents, fetched once.
    const_spec = pl.BlockSpec(memory_space=pltpu.MemorySpace.VMEM)

    out_padded = pl.pallas_call(
        autoencoder_kernel,
        out_shape=jax.ShapeDtypeStruct((B, D_pad), out_dtype),
        grid_spec=pltpu.PrefetchScalarGridSpec(
            num_scalar_prefetch=0,
            grid=grid,
            in_specs=[
                pl.BlockSpec((tm, D_pad), lambda i: (i, 0)),   # x tile (pipelined)
                const_spec,  # W12
                const_spec,  # b12
                const_spec,  # W34
                const_spec,  # b34
            ],
            out_specs=pl.BlockSpec((tm, D_pad), lambda i: (i, 0)),
        ),
        compiler_params=pltpu.CompilerParams(
            dimension_semantics=("parallel",),
            vmem_limit_bytes=vmem_limit,
        ),
        cost_estimate=cost,
    )(x_in, w12, b12, w34, b34)

    return out_padded if D_pad == D_in else out_padded[:, :D_in]


# ----------------------------- init & references ---------------------------- #

def init_params(key, input_dim, encoding_dim):
    """PyTorch nn.Linear default init: U(-1/sqrt(fan_in), 1/sqrt(fan_in))."""
    half = encoding_dim // 2
    dims = [(input_dim, encoding_dim),   # encoder layer 1
            (encoding_dim, half),        # encoder layer 2
            (half, encoding_dim),        # decoder layer 1
            (encoding_dim, input_dim)]   # decoder layer 2
    params = {}
    keys = jax.random.split(key, 2 * len(dims))
    for idx, (fan_in, fan_out) in enumerate(dims):
        bound = 1.0 / jnp.sqrt(jnp.float32(fan_in))
        params[f"w{idx + 1}"] = jax.random.uniform(
            keys[2 * idx], (fan_in, fan_out),
            minval=-bound, maxval=bound, dtype=jnp.float32)
        params[f"b{idx + 1}"] = jax.random.uniform(
            keys[2 * idx + 1], (1, fan_out),
            minval=-bound, maxval=bound, dtype=jnp.float32)
    return params


def autoencoder_reference(x, p):
    """Exact fp32, unfused reference (mirrors the PyTorch module)."""
    h1 = x @ p["w1"] + p["b1"]
    h2 = h1 @ p["w2"] + p["b2"]
    enc = jnp.maximum(h2, 0.0)
    h3 = enc @ p["w3"] + p["b3"]
    return h3 @ p["w4"] + p["b4"]


def fused_reference(x, params, compute_dtype=jnp.bfloat16):
    """Plain-JAX model of exactly what the kernel computes (fused + bf16 inputs)."""
    B, D_in = x.shape
    w12, b12, w34, b34, d_pad, _ = fuse_params(params, D_in, compute_dtype)
    xp = x if d_pad == D_in else jnp.pad(x, ((0, 0), (0, d_pad - D_in)))
    xc = xp.astype(compute_dtype).astype(jnp.float32)
    h = xc @ w12.astype(jnp.float32) + b12
    enc = jnp.maximum(h, 0.0)
    out = enc.astype(compute_dtype).astype(jnp.float32) @ w34.astype(jnp.float32) + b34
    return out[:, :D_in]


# TODO(synk): fit() (Adam training loop) and transform()/reconstruct() numpy glue are
# host-side utilities, not part of the forward pass, and are not kernelized.

if __name__ == "__main__":
    # Small shapes consistent with the module; batch large enough for a 2-step grid.
    batch, input_dim, encoding_dim = 128, 64, 32

    key = jax.random.PRNGKey(0)
    k_x, k_p = jax.random.split(key)
    x = jax.random.normal(k_x, (batch, input_dim), dtype=jnp.float32)
    params = init_params(k_p, input_dim, encoding_dim)

    out = jax.block_until_ready(autoencoder_forward(x, params))
    assert out.shape == (batch, input_dim)
    assert out.dtype == x.dtype

    # Check against a plain-JAX model of the exact fused/bf16 computation
    # (small tolerance only for accumulation-order differences MXU vs XLA).
    ref_same_precision = fused_reference(x, params, compute_dtype=jnp.bfloat16)
    assert jnp.allclose(out, ref_same_precision, atol=2e-3, rtol=2e-3), \
        "mismatch vs fused bf16 reference"

    # Loose check against the exact fp32 unfused module semantics.
    ref_exact = autoencoder_reference(x, params)
    assert jnp.allclose(out, ref_exact, atol=5e-2, rtol=5e-2), \
        "mismatch vs exact fp32 module reference"

    print("KERNEL_OK")
</pallas_src>

<mosaic_0001>
module attributes {stable_mosaic.version = 11 : i64} {
  func.func @autoencoder_kernel(%arg0: i32, %arg1: memref<64x128xbf16, #tpu.memory_space<vmem>>, %arg2: memref<128x128xbf16, #tpu.memory_space<vmem>>, %arg3: memref<1x128xf32, #tpu.memory_space<vmem>>, %arg4: memref<128x128xbf16, #tpu.memory_space<vmem>>, %arg5: memref<1x128xf32, #tpu.memory_space<vmem>>, %arg6: memref<64x128xf32, #tpu.memory_space<vmem>>) attributes {dimension_semantics = [#tpu.dimension_semantics<parallel>], iteration_bounds = array<i64: 2>, scalar_prefetch = 0 : i64, scratch_operands = 0 : i64, tpu.core_type = #tpu.core_type<tc>, window_params = [{transform_indices = @transform_0, window_bounds = array<i64: 64, 128>}, {pipeline_mode = #tpu.pipeline_mode<synchronous>, transform_indices = @transform_1, window_bounds = array<i64: 128, 128>}, {pipeline_mode = #tpu.pipeline_mode<synchronous>, transform_indices = @transform_2, window_bounds = array<i64: 1, 128>}, {pipeline_mode = #tpu.pipeline_mode<synchronous>, transform_indices = @transform_3, window_bounds = array<i64: 128, 128>}, {pipeline_mode = #tpu.pipeline_mode<synchronous>, transform_indices = @transform_4, window_bounds = array<i64: 1, 128>}, {transform_indices = @transform_5, window_bounds = array<i64: 64, 128>}]} {
    %c0 = arith.constant 0 : index
    %c0_0 = arith.constant 0 : index
    %0 = vector.load %arg1[%c0, %c0_0] : memref<64x128xbf16, #tpu.memory_space<vmem>>, vector<64x128xbf16>
    %c0_1 = arith.constant 0 : index
    %c0_2 = arith.constant 0 : index
    %1 = vector.load %arg2[%c0_1, %c0_2] : memref<128x128xbf16, #tpu.memory_space<vmem>>, vector<128x128xbf16>
    %cst = arith.constant dense<0.000000e+00> : vector<64x128xf32>
    %2 = tpu.matmul %0, %1, %cst {dimension_numbers = #tpu.dot_dimension_numbers<[1], [0], [0], [1], [0, 0, 1, 1], [], []>} : vector<64x128xbf16>, vector<128x128xbf16>, vector<64x128xf32> -> vector<64x128xf32>
    %c0_3 = arith.constant 0 : index
    %c0_4 = arith.constant 0 : index
    %3 = vector.load %arg3[%c0_3, %c0_4] : memref<1x128xf32, #tpu.memory_space<vmem>>, vector<1x128xf32>
    %4 = vector.broadcast %3 : vector<1x128xf32> to vector<64x128xf32>
    %5 = arith.addf %2, %4 : vector<64x128xf32>
    %cst_5 = arith.constant 0.000000e+00 : f32
    %6 = vector.broadcast %cst_5 : f32 to vector<64x128xf32>
    %7 = arith.maximumf %5, %6 : vector<64x128xf32>
    %8 = arith.truncf %7 : vector<64x128xf32> to vector<64x128xbf16>
    %c0_6 = arith.constant 0 : index
    %c0_7 = arith.constant 0 : index
    %9 = vector.load %arg4[%c0_6, %c0_7] : memref<128x128xbf16, #tpu.memory_space<vmem>>, vector<128x128xbf16>
    %cst_8 = arith.constant dense<0.000000e+00> : vector<64x128xf32>
    %10 = tpu.matmul %8, %9, %cst_8 {dimension_numbers = #tpu.dot_dimension_numbers<[1], [0], [0], [1], [0, 0, 1, 1], [], []>} : vector<64x128xbf16>, vector<128x128xbf16>, vector<64x128xf32> -> vector<64x128xf32>
    %c0_9 = arith.constant 0 : index
    %c0_10 = arith.constant 0 : index
    %11 = vector.load %arg5[%c0_9, %c0_10] : memref<1x128xf32, #tpu.memory_space<vmem>>, vector<1x128xf32>
    %12 = vector.broadcast %11 : vector<1x128xf32> to vector<64x128xf32>
    %13 = arith.addf %10, %12 : vector<64x128xf32>
    %c0_11 = arith.constant 0 : index
    %c0_12 = arith.constant 0 : index
    %14 = vector.load %arg6[%c0_11, %c0_12] : memref<64x128xf32, #tpu.memory_space<vmem>>, vector<64x128xf32>
    tpu.vector_store %arg6[%c0_11, %c0_12], %13 {strides = array<i32>} : memref<64x128xf32, #tpu.memory_space<vmem>>, vector<64x128xf32>,
    return
  }
  func.func @transform_0(%arg0: i32) -> (i32, i32) {
    %c0_i32 = arith.constant 0 : i32
    %c0_i32_0 = arith.constant 0 : i32
    return %arg0, %c0_i32 : i32, i32
  }
  func.func @transform_1(%arg0: i32) -> (i32, i32) {
    %c0_i32 = arith.constant 0 : i32
    %c0_i32_0 = arith.constant 0 : i32
    %c0_i32_1 = arith.constant 0 : i32
    return %c0_i32, %c0_i32_0 : i32, i32
  }
  func.func @transform_2(%arg0: i32) -> (i32, i32) {
    %c0_i32 = arith.constant 0 : i32
    %c0_i32_0 = arith.constant 0 : i32
    %c0_i32_1 = arith.constant 0 : i32
    return %c0_i32, %c0_i32_0 : i32, i32
  }
  func.func @transform_3(%arg0: i32) -> (i32, i32) {
    %c0_i32 = arith.constant 0 : i32
    %c0_i32_0 = arith.constant 0 : i32
    %c0_i32_1 = arith.constant 0 : i32
    return %c0_i32, %c0_i32_0 : i32, i32
  }
  func.func @transform_4(%arg0: i32) -> (i32, i32) {
    %c0_i32 = arith.constant 0 : i32
    %c0_i32_0 = arith.constant 0 : i32
    %c0_i32_1 = arith.constant 0 : i32
    return %c0_i32, %c0_i32_0 : i32, i32
  }
  func.func @transform_5(%arg0: i32) -> (i32, i32) {
    %c0_i32 = arith.constant 0 : i32
    %c0_i32_0 = arith.constant 0 : i32
    return %arg0, %c0_i32 : i32, i32
  }
}

</mosaic_0001>

<bundles_post_ra>
// kernel: tpu_custom_call.1
= control target key start
LH: loop header
LB: loop body
LE: loop exit
PB: predicated region body
PF: predicated region fallthrough
CT: control target
= control target key end

     0   :  { %10 = vsyncpa [#allocation3], 0  ;;  %s1362_s0 = inlined_call_operand.hbm [shape: bf16[128,128], index: 0, kind: input, shape index: {}]   ;;  %s1363_s1 = inlined_call_operand.hbm [shape: bf16[128,128], index: 1, kind: input, shape index: {}]   ;;  %s1364_s2 = inlined_call_operand.vmem [shape: f32[1,128], index: 2, kind: input, shape index: {}]   ;;  %s1365_s3 = inlined_call_operand.hbm [shape: bf16[128,128], index: 3, kind: input, shape index: {}]   ;;  %s1366_s4 = inlined_call_operand.vmem [shape: f32[1,128], index: 4, kind: input, shape index: {}]   ;;  %s1367_s5 = inlined_call_operand.hbm [shape: f32[128,128], index: 5, kind: output, shape index: {}]  }
   0x1   :  { %12 = vsyncpa [#allocation3 + $0x1], 0 }
   0x2   :  { %13 = vsyncpa [#allocation6], 0 }
   0x3   :  { %14 = vsyncpa [#allocation4], 0 }
   0x4   :  { %16 = vsyncpa [#allocation4 + $0x1], 0  ;;  %s1106_s18 = smov 0   ;;  %s1108_s19 = smov 0  }
   0x5   :  { %s1110_s20 = smov 0   ;;  %s1112_s21 = smov 0  }
   0x6 LB: > { %s1127_s22 = sadd.s32 4294967295, %s1066_s21   ;;  %s705_s23 = sadd.s32 4294967294, %s1066_s21   ;;  %s1066_s21 = sphi %s1112_s21, %s1387_s21   ;;  %s1062_s20 = sphi %s1110_s20, %s1386_s20   ;;  %s1058_s19 = sphi %s1108_s19, %s1385_s19   ;;  %s1054_s18 = sphi %s1106_s18, %s1384_s18  }
   0x7   : > { %p42_p0 = scmp.ne.s32.totalorder %s1058_s19, %s1054_s18  ;;  %p1368_p1 = scmp.eq.s32.totalorder %s1127_s22, 0 }
   0x8   : > { %p156_p3 = scmp.eq.s32.totalorder %s705_s23, 1  ;;  %p706_p5 = scmp.ge.s32.totalorder %s1066_s21, 1 }
   0x9   : > { %p1136_p4 = por %p1368_p1, %p42_p0  ;;  %p163_p7 = scmp.lt.s32.totalorder %s1066_s21, 3 }
   0xa   : > { %p1141_p6 = por %p156_p3, %p42_p0  ;;  %s1068_s27 = smov [#allocation5]  }
   0xb   : > { %s1371_s24 = scalar_select %p1136_p4, 1, 0 }
   0xc   : > { %s1372_s25 = scalar_select %p1141_p6, 1, 0 }
   0xd   : > { %p1146_p8 = pnand %p706_p5, %p163_p7  ;;  %s175_s28 = sshll.u32 %s1068_s27, 4  ;;  %s1150_s28 = int_to_ptr.vmem [resolvable:$true] %s175_s28 }
   0xe   : > { %s1069_s30 = smov [#allocation7]   ;;  %s910_s9 = scalar_lea.hbm %s1363_s1, 1024 }
   0xf   : > { %p831_p9 = pneg %p1146_p8  ;;  %s191_s6 = sshll.u32 %s1069_s30, 4  ;;  %s1161_s6 = int_to_ptr.vmem [resolvable:$true] %s191_s6 }
  0x10   : > { %p911_p12 = scmp.ne.s32.totalorder %s1363_s1, %s910_s9  ;;  %p917_p5 = scmp.lt.u32.totalorder %s910_s9, %s1363_s1 }
  0x11   : > { %p1157_p11 = pnand %p831_p9, %p1368_p1 }
  0x13   : > { %p912_p13 = pneg %p1157_p11 }
  0x15   : > { %p913_p0 = pnand %p912_p13, %p911_p12 }
  0x17   : > { %p914_p3 = pneg %p913_p0 }
  0x19   : > { %p919_p7 = pnand %p917_p5, %p914_p3 }
  0x1b   : > { %922 = shalt.err (!%p919_p7)
}
  0x1c   : > { %s923_s14 = scalar_lea.vmem %s1150_s28, 1024  ;;  %p931_p2 = scmp.lt.s32.totalorder %s1150_s28, %s1150_s28 }
  0x1d   : > { %p924_p9 = scmp.ne.s32.totalorder %s1150_s28, %s923_s14  ;;  %p932_p12 = scmp.lt.s32.totalorder %s923_s14, %s923_s14 }
  0x1f   : > { %p926_p10 = pnand %p924_p9, %p912_p13  ;;  %p933_p0 = por %p932_p12, %p931_p2 }
  0x21   : > { %p927_p1 = pneg %p926_p10 }
  0x23   : > { %p934_p6 = pnand %p933_p0, %p927_p1 }
  0x25   : > { %937 = shalt.err (!%p934_p6)
}
  0x26   : > { %s1070_s15 = smov 64   ;;  %s1071_s16 = smov 4  }
  0x27   : > { %834 = dma.hbm_to_vmem [thread:$0]  (!%p1157_p11), %s1363_s1, 1024, %s1150_s28, [#allocation6], %s1070_s15, %s1070_s15, %s1071_s16  }
  0x28   : > { %s938_s7 = scalar_lea.hbm %s1365_s3, 1024 }
  0x29   : > { %p939_p1 = scmp.ne.s32.totalorder %s1365_s3, %s938_s7  ;;  %p945_p10 = scmp.lt.u32.totalorder %s938_s7, %s1365_s3 }
  0x2b   : > { %p941_p2 = pnand %p939_p1, %p912_p13 }
  0x2d   : > { %p942_p6 = pneg %p941_p2 }
  0x2f   : > { %p947_p3 = pnand %p945_p10, %p942_p6 }
  0x31   : > { %950 = shalt.err (!%p947_p3)
}
  0x32   : > { %s951_s28 = scalar_lea.vmem %s1161_s6, 1024  ;;  %p959_p12 = scmp.lt.s32.totalorder %s1161_s6, %s1161_s6 }
  0x33   : > { %p952_p5 = scmp.ne.s32.totalorder %s1161_s6, %s951_s28  ;;  %p960_p0 = scmp.lt.s32.totalorder %s951_s28, %s951_s28 }
  0x35   : > { %p954_p7 = pnand %p952_p5, %p912_p13  ;;  %p961_p1 = por %p960_p0, %p959_p12 }
  0x37   : > { %p955_p9 = pneg %p954_p7 }
  0x39   : > { %p962_p2 = pnand %p961_p1, %p955_p9 }
  0x3b   : > { %965 = shalt.err (!%p962_p2)
}
  0x3c   : > { %837 = dma.hbm_to_vmem [thread:$0]  (!%p1157_p11), %s1365_s3, 1024, %s1161_s6, [#allocation6], %s1070_s15, %s1070_s15, %s1071_s16  }
  0x3d   : > { %s1222_s29 = sadd.s32 1, %s1066_s21   ;;  %s29_s14 = sadd.s32 1, %s1062_s20 }
  0x3e   : > { %s26_s17 = ssub.s32 %s1066_s21, %s1222_s29  ;;  %p36_p13 = scmp.ne.s32.totalorder %s1062_s20, %s1058_s19 }
  0x3f   : > { %p27_p6 = scmp.eq.s32.totalorder %s26_s17, 0  ;;  %p37_p10 = scmp.eq.s32.totalorder %s1066_s21, 0 }
  0x40   : > { %p1375_p3 = scmp.eq.s32.totalorder %s1127_s22, 1  ;;  %p848_p7 = scmp.lt.s32.totalorder %s1066_s21, 2 }
  0x41   : > { %s1238_s27 = scalar_select %p27_p6, %s1062_s20, %s29_s14  }
  0x42   : > { %p1232_p5 = por %p1375_p3, %p36_p13  ;;  %p38_p9 = por %p37_p10, %p36_p13 }
  0x43   : > { %s208_s30 = sand.u32 1, %s1062_s20   ;;  %s745_s6 = sshll.u32 %s1066_s21, 9 }
  0x44   : > { %s1376_s23 = scalar_select %p1232_p5, 1, 0 }
  0x45   : > { %s710_s7 = sshll.u32 %s208_s30, 5  ;;  %s1245_s10 = scalar_lea.hbm %s1362_s0, %s745_s6 }
  0x46   : > { %s212_s11 = scalar_lea.vmem [#allocation2], %s710_s7  ;;  %p1249_p11 = pnand %p848_p7, %p38_p9 }
  0x47   : > { %s219_s28 = sshll.u32 %s212_s11, 4  ;;  %s1253_s13 = scalar_lea.sflag [#allocation3], %s208_s30  ;;  %s1247_s28 = int_to_ptr.vmem [resolvable:$true] %s219_s28 }
  0x48   : > { %s966_s14 = scalar_lea.hbm %s1245_s10, 512  ;;  %p968_p0 = pneg %p1249_p11 }
  0x49   : > { %p967_p12 = scmp.ne.s32.totalorder %s1245_s10, %s966_s14  ;;  %s971_s6 = scalar_lea.hbm %s1362_s0, 1024 }
  0x4a   : > { %p972_p13 = scmp.lt.u32.totalorder %s1245_s10, %s1362_s0  ;;  %p973_p6 = scmp.lt.u32.totalorder %s971_s6, %s966_s14 }
  0x4b   : > { %p969_p1 = pnand %p968_p0, %p967_p12  ;;  %p975_p3 = scmp.lt.u32.totalorder %s966_s14, %s1245_s10 }
  0x4c   : > { %p974_p10 = por %p973_p6, %p972_p13 }
  0x4d   : > { %p970_p2 = pneg %p969_p1 }
  0x4e   : > { %p976_p7 = por %p975_p3, %p974_p10 }
  0x50   : > { %p977_p9 = pnand %p976_p7, %p970_p2 }
  0x52   : > { %980 = shalt.err (!%p977_p9)
}
  0x53   : > { %s981_s30 = scalar_lea.vmem %s1247_s28, 512  ;;  %s1072_s11 = smov [#allocation2]  }
  0x54   : > { %p982_p12 = scmp.ne.s32.totalorder %s1247_s28, %s981_s30  ;;  %s986_s17 = sshll.u32 %s1072_s11, 4  ;;  %s987_s17 = int_to_ptr.vmem [resolvable:$false] %s986_s17 }
  0x55   : > { %s988_s7 = scalar_lea.vmem %s987_s17, 1024  ;;  %p989_p4 = scmp.lt.s32.totalorder %s1247_s28, %s987_s17 }
  0x56   : > { %p984_p1 = pnand %p982_p12, %p968_p0  ;;  %p990_p13 = scmp.lt.s32.totalorder %s988_s7, %s981_s30 }
  0x58   : > { %p985_p5 = pneg %p984_p1  ;;  %p991_p6 = por %p990_p13, %p989_p4 }
  0x5a   : > { %p992_p10 = pnand %p991_p6, %p985_p5 }
  0x5c   : > { %995 = shalt.err (!%p992_p10)
}
  0x5d   : > { %841 = dma.hbm_to_vmem [thread:$0]  (!%p1249_p11), %s1245_s10, 512, %s1247_s28, %s1253_s13, %s1070_s15, %s1070_s15, %s1071_s16  }
  0x5e   : > { %231 = sbr.rel (%p1146_p8) target bundleno = 600 (0x258), region = 40  ;;  %s1287_s14 = sand.u32 (!%p1146_p8), 1, %s1058_s19  }
  0x5f   : > { %s714_s6 = sshll.u32 (!%p1146_p8), %s1287_s14, 5  ;;  %s234_s8 = scalar_lea.sflag (!%p1146_p8), [#allocation3], %s1287_s14 }
  0x60   : > { %s1291_s9 = scalar_lea.vmem (!%p1146_p8), [#allocation2], %s714_s6  ;;  %p1378_p4 = scmp.ne.s32.totalorder (!%p1146_p8), %s1371_s24, 0 }
  0x65   : > { %1041 = dma.done.wait (%p1378_p4), %s234_s8, 512  }
  0x66   : > { %1043 = vsyncadd (%p1378_p4), %s234_s8, 4294966784  ;;  %p1379_p5 = scmp.eq.s32.totalorder %s1127_s22, 0 }
  0x68   : > { %1045 = dma.done.wait (%p1379_p5), [#allocation6], 2048   ;;  %p1380_p8 = pmov %p1379_p5 }
  0x69   : > { %v890_v0 = vld [vmem:[#allocation5] sm:$0xff]   ;;  %v891_v1 = vld [vmem:[#allocation5 + $0x8] sm:$0xff]   ;;  %v892_v2 = vld [vmem:[#allocation5 + $0x10] sm:$0xff]   ;;  %s717_s15 = sshll.u32 %s1287_s14, 6  ;;  %s746_s13 = sshll.u32 %s1127_s22, 10 }
  0x6a   : > { %1047 = vsyncadd (%p1380_p8), [#allocation6], 4294965248  ;;  %771 = vmatprep.subr.bf16.mxu0 %v890_v0  ;;  %v893_v3 = vld [vmem:[#allocation5 + $0x18] sm:$0xff]   ;;  %v898_v4 = vld [vmem:[%s1291_s9] sm:$0xff]   ;;  %s271_s28 = scalar_lea.vmem [#allocation8], %s717_s15  ;;  %s1318_s17 = scalar_lea.hbm %s1367_s5, %s746_s13 }
  0x6b   : > { %772 = vmatpush3.bf16.msra.mxu0 %v890_v0  ;;  %787 = vmatprep.mubr.bf16.mxu0 %v898_v4  ;;  %v894_v5 = vld [vmem:[#allocation5 + $0x20] sm:$0xff]   ;;  %v903_v7 = vld [vmem:[#allocation7 + $0x8] sm:$0xff]   ;;  %v904_v9 = vld [vmem:[#allocation7 + $0x10] sm:$0xff]   ;;  %s613_s12 = sshll.u32 %s271_s28, 4  ;;  %s600_s22 = scalar_lea.sflag [#allocation4], %s1287_s14  ;;  %s1313_s12 = int_to_ptr.vmem [resolvable:$true] %s613_s12 }
  0x6c   : > { %773 = vmatprep.subr.bf16.mxu0 %v891_v1  ;;  %v902_v6 = vld [vmem:[#allocation7] sm:$0xff]   ;;  %v895_v8 = vld [vmem:[#allocation5 + $0x28] sm:$0xff]   ;;  %v896_v10 = vld [vmem:[#allocation5 + $0x30] sm:$0xff]   ;;  %s996_s7 = scalar_lea.vmem %s1313_s12, 1024  ;;  %p1381_p0 = scmp.ne.s32.totalorder %s1376_s23, 0 }
  0x6d   : > { %795 = vmatprep.subr.bf16.mxu1 %v902_v6  ;;  %v905_v11 = vld [vmem:[#allocation7 + $0x18] sm:$0xff]   ;;  %v906_v13 = vld [vmem:[#allocation7 + $0x20] sm:$0xff]   ;;  %v907_v14 = vld [vmem:[#allocation7 + $0x28] sm:$0xff]   ;;  %p997_p11 = scmp.ne.s32.totalorder %s1313_s12, %s996_s7  ;;  %s1073_s6 = smov [#allocation8]  }
  0x6e   : > { %796 = vmatpush3.bf16.msra.mxu1 %v902_v6  ;;  %v897_v12 = vld [vmem:[#allocation5 + $0x38] sm:$0xff]   ;;  %v899_v15 = vld [vmem:[%s1291_s9 + $0x8] sm:$0xff]   ;;  %v900_v16 = vld [vmem:[%s1291_s9 + $0x10] sm:$0xff]   ;;  %s1000_s8 = sshll.u32 %s1073_s6, 4  ;;  %s1001_s8 = int_to_ptr.vmem [resolvable:$false] %s1000_s8 }
  0x6f   : > { %774 = vmatpush3.bf16.msra.mxu0 %v891_v1  ;;  %797 = vmatprep.subr.bf16.mxu1 %v903_v7  ;;  %v901_v17 = vld [vmem:[%s1291_s9 + $0x18] sm:$0xff]   ;;  %v908_v18 = vld [vmem:[#allocation7 + $0x30] sm:$0xff]   ;;  %v718_v20 = vld [vmem:[%s1364_s2] ss:$0 sm:$0xff]  ;;  %p998_p2 = pnand %p997_p11, %p1381_p0  ;;  %s1002_s9 = scalar_lea.vmem %s1001_s8, 2048 }
  0x70   : > { %775 = vmatprep.subr.bf16.mxu0 %v892_v2  ;;  %v909_v19 = vld [vmem:[#allocation7 + $0x38] sm:$0xff]   ;;  %v731_v49 = vld [vmem:[%s1366_s4] ss:$0 sm:$0xff]  ;;  %p1003_p7 = scmp.lt.s32.totalorder %s1313_s12, %s1001_s8  ;;  %p1004_p9 = scmp.lt.s32.totalorder %s1002_s9, %s996_s7 }
  0x71   : > { %p999_p3 = pneg %p998_p2 }
  0x72   : > { %798 = vmatpush3.bf16.msra.mxu1 %v903_v7  ;;  %p1005_p12 = por %p1004_p9, %p1003_p7 }
  0x73   : > { %776 = vmatpush3.bf16.msra.mxu0 %v892_v2  ;;  %799 = vmatprep.subr.bf16.mxu1 %v904_v9 }
  0x74   : > { %777 = vmatprep.subr.bf16.mxu0 %v893_v3  ;;  %p1006_p1 = pnand %p1005_p12, %p999_p3 }
  0x76   : > { %800 = vmatpush3.bf16.msra.mxu1 %v904_v9 }
  0x77   : > { %778 = vmatpush3.bf16.msra.mxu0 %v893_v3  ;;  %801 = vmatprep.subr.bf16.mxu1 %v905_v11 }
  0x78   : > { %779 = vmatprep.subr.bf16.mxu0 %v894_v5 }
  0x7a   : > { %802 = vmatpush3.bf16.msra.mxu1 %v905_v11 }
  0x7b   : > { %780 = vmatpush3.bf16.msra.mxu0 %v894_v5  ;;  %803 = vmatprep.subr.bf16.mxu1 %v906_v13 }
  0x7c   : > { %781 = vmatprep.subr.bf16.mxu0 %v895_v8 }
  0x7e   : > { %804 = vmatpush3.bf16.msra.mxu1 %v906_v13 }
  0x7f   : > { %782 = vmatpush3.bf16.msra.mxu0 %v895_v8  ;;  %805 = vmatprep.subr.bf16.mxu1 %v907_v14 }
  0x80   : > { %783 = vmatprep.subr.bf16.mxu0 %v896_v10 }
  0x82   : > { %806 = vmatpush3.bf16.msra.mxu1 %v907_v14 }
  0x83   : > { %784 = vmatpush3.bf16.msra.mxu0 %v896_v10  ;;  %807 = vmatprep.subr.bf16.mxu1 %v908_v18 }
  0x84   : > { %785 = vmatprep.subr.bf16.mxu0 %v897_v12 }
  0x86   : > { %808 = vmatpush3.bf16.msra.mxu1 %v908_v18 }
  0x87   : > { %786 = vmatpush3.bf16.msra.mxu0 %v897_v12  ;;  %809 = vmatprep.subr.bf16.mxu1 %v909_v19 }
  0x8a   : > { %788 = vmatmul.mubr.bf16.vlgmr.msra.gmra.mrb[0].mxu0 %v899_v15  ;;  %810 = vmatpush3.bf16.msra.mxu1 %v909_v19 }
  0x8b   : > { %791 = vmatprep.mubr.bf16.mxu0 %v900_v16 }
  0x92   : > { %792 = vmatmul.mubr.bf16.gmra.mrb[4].mxu0 %v901_v17 }
 0x15d   : > { %v789_v21 = vpop.f32.mrb[0].mxu0 }
 0x15e   : > { %v421_v22 = vadd.f32 %v789_v21, %v718_v20  ;;  %v412_v23 = vpop.f32.mrb[1].mxu0 }
 0x15f   : > { %v413_v24 = vadd.f32 %v718_v20, %v412_v23  ;;  %v790_v25 = vpop.f32.mrb[2].mxu0 }
 0x160   : > { %v424_v26 = vadd.f32 %v790_v25, %v718_v20  ;;  %v415_v27 = vpop.f32.mrb[3].mxu0  ;;  %v445_v29 = vmax.f32 %v421_v22, 0.0 }
 0x161   : > { %v416_v28 = vadd.f32 %v718_v20, %v415_v27  ;;  %v443_v31 = vmax.f32 %v413_v24, 0.0 }
 0x162   : > { %v446_v30 = vmax.f32 %v424_v26, 0.0 }
 0x163   : > { %v444_v32 = vmax.f32 %v416_v28, 0.0 }
 0x164   : > { %v452_v33 = vpack.c.bf16 %v446_v30, %v445_v29 }
 0x165   : > { %v793_v34 = vpop.f32.mrb[4].mxu0  ;;  %v451_v35 = vpack.c.bf16 %v444_v32, %v443_v31 }
 0x166   : > { %v437_v36 = vadd.f32 %v793_v34, %v718_v20  ;;  %v428_v37 = vpop.f32.mrb[5].mxu0 }
 0x167   : > { %v429_v38 = vadd.f32 %v718_v20, %v428_v37  ;;  %v794_v39 = vpop.f32.mrb[6].mxu0  ;;  %811 = vmatprep.mubr.bf16.mxu1 %v451_v35 }
 0x168   : > { %v440_v40 = vadd.f32 %v794_v39, %v718_v20  ;;  %v431_v41 = vpop.f32.mrb[7].mxu0  ;;  %812 = vmatmul.mubr.bf16.vlgmr.msra.gmra.mrb[0].mxu1 %v452_v33  ;;  %v449_v43 = vmax.f32 %v437_v36, 0.0 }
 0x169   : > { %v432_v42 = vadd.f32 %v718_v20, %v431_v41  ;;  %v447_v45 = vmax.f32 %v429_v38, 0.0 }
 0x16a   : > { %v450_v44 = vmax.f32 %v440_v40, 0.0 }
 0x16b   : > { %v448_v46 = vmax.f32 %v432_v42, 0.0 }
 0x16c   : > { %v454_v47 = vpack.c.bf16 %v450_v44, %v449_v43 }
 0x16d   : > { %v453_v48 = vpack.c.bf16 %v448_v46, %v447_v45 }
 0x16f   : > { %815 = vmatprep.mubr.bf16.mxu1 %v453_v48 }
 0x170   : > { %816 = vmatmul.mubr.bf16.gmra.mrb[4].mxu1 %v454_v47 }
 0x23b   : > { %v813_v50 = vpop.f32.mrb[0].mxu1 }
 0x23c   : > { %v569_v51 = vadd.f32 %v813_v50, %v731_v49  ;;  %v560_v52 = vpop.f32.mrb[1].mxu1 }
 0x23d   : > { %v561_v53 = vadd.f32 %v731_v49, %v560_v52  ;;  %v814_v54 = vpop.f32.mrb[2].mxu1 }
 0x23e   : > { %593 = vst [vmem:[%s271_s28 + $0x10] sm:$0xff] %v569_v51  ;;  %v572_v55 = vadd.f32 %v814_v54, %v731_v49  ;;  %v563_v56 = vpop.f32.mrb[3].mxu1 }
 0x23f   : > { %591 = vst [vmem:[%s271_s28] sm:$0xff] %v561_v53  ;;  %v564_v57 = vadd.f32 %v731_v49, %v563_v56 }
 0x240   : > { %594 = vst [vmem:[%s271_s28 + $0x18] sm:$0xff] %v572_v55 }
 0x241   : > { %592 = vst [vmem:[%s271_s28 + $0x8] sm:$0xff] %v564_v57 }
 0x243   : > { %v817_v58 = vpop.f32.mrb[4].mxu1 }
 0x244   : > { %v585_v59 = vadd.f32 %v817_v58, %v731_v49  ;;  %v576_v60 = vpop.f32.mrb[5].mxu1 }
 0x245   : > { %v577_v61 = vadd.f32 %v731_v49, %v576_v60  ;;  %v818_v62 = vpop.f32.mrb[6].mxu1 }
 0x246   : > { %597 = vst [vmem:[%s271_s28 + $0x30] sm:$0xff] %v585_v59  ;;  %v588_v63 = vadd.f32 %v818_v62, %v731_v49  ;;  %v579_v0 = vpop.f32.mrb[7].mxu1 }
 0x247   : > { %595 = vst [vmem:[%s271_s28 + $0x20] sm:$0xff] %v577_v61  ;;  %v580_v1 = vadd.f32 %v731_v49, %v579_v0 }
 0x248   : > { %598 = vst [vmem:[%s271_s28 + $0x38] sm:$0xff] %v588_v63 }
 0x249   : > { %596 = vst [vmem:[%s271_s28 + $0x28] sm:$0xff] %v580_v1 }
 0x24a   : > { %1009 = shalt.err (!%p1006_p1)
}
 0x24b   : > { %s1010_s24 = scalar_lea.hbm %s1318_s17, 1024  ;;  %s1014_s16 = scalar_lea.hbm %s1367_s5, 2048 }
 0x24c   : > { %p1011_p13 = scmp.ne.s32.totalorder %s1318_s17, %s1010_s24  ;;  %p1015_p4 = scmp.lt.u32.totalorder %s1318_s17, %s1367_s5 }
 0x24d   : > { %p1016_p5 = scmp.lt.u32.totalorder %s1014_s16, %s1010_s24  ;;  %p1018_p11 = scmp.lt.u32.totalorder %s1010_s24, %s1318_s17 }
 0x24e   : > { %p1012_p6 = pnand %p1011_p13, %p1381_p0 }
 0x24f   : > { %p1017_p8 = por %p1016_p5, %p1015_p4 }
 0x250   : > { %p1013_p10 = pneg %p1012_p6 }
 0x251   : > { %p1019_p2 = por %p1018_p11, %p1017_p8 }
 0x253   : > { %p1020_p3 = pnand %p1019_p2, %p1013_p10 }
 0x255   : > { %1023 = shalt.err (!%p1020_p3)
}
 0x256   : > { %s1074_s13 = smov 128   ;;  %s1075_s30 = smov 8  }
 0x257   : > { %829 = dma.vmem_to_hbm [thread:$0]  (%p1381_p0), %s1313_s12, 1024, %s1318_s17, %s600_s22, %s1074_s13, %s1074_s13, %s1075_s30  }
 0x258 PF: > { %s628_s11 = sand.u32 1, %s1054_s18   ;;  %p1382_p7 = scmp.ne.s32.totalorder %s1372_s25, 0 }
 0x259   : > { %p1383_p9 = scmp.ge.s32.totalorder %s1066_s21, 2  ;;  %s629_s7 = scalar_lea.sflag [#allocation4], %s628_s11 }
 0x25b   : > { %p843_p12 = pnand %p1383_p9, %p1382_p7 }
 0x25d   : > { %1049 = dma.done.wait (!%p843_p12), %s629_s7, 1024  }
 0x25e   : > { %1051 = vsyncadd (!%p843_p12), %s629_s7, 4294966272  ;;  %p19_p1 = scmp.ge.s32.totalorder %s1222_s29, 4   ;;  %s1384_s18 = smov %s1058_s19 }
 0x25f   : > { %s1385_s19 = smov %s1062_s20  ;;  %s1386_s20 = smov %s1238_s27 }
 0x260   : > { %s1387_s21 = smov %s1222_s29  ;;  %21 = sbr.rel (!%p19_p1) target bundleno = 6 (0x6), region = 93 }
 0x267   :  { %634 = vsyncpa [#allocation3], 1 }
 0x268   :  { %636 = vsyncpa [#allocation3 + $0x1], 1 }
 0x269   :  { %637 = vsyncpa [#allocation6], 1 }
 0x26a   :  { %638 = vsyncpa [#allocation4], 1 }
 0x26b   :  { %640 = vsyncpa [#allocation4 + $0x1], 1 }

</bundles_post_ra>
